<compile_context>
chip_gen: v5e
topology: v5e:2x2
jax: 0.10.0
libtpu: 0.0.40
codegen_flags: <defaults>
</compile_context>

<pallas_src>
import functools
import math

import jax
import jax.numpy as jnp
from jax import lax
from jax.experimental import pallas as pl
from jax.experimental.pallas import tpu as pltpu


# ---------------------------------------------------------------------------
# Pallas kernel: fused pixel-unshuffle (already laid out as im2col rows) +
#                1x1 tail conv.  One grid step == one image == one MXU matmul.
# ---------------------------------------------------------------------------
def _tail_conv1x1_kernel(a_ref, w_ref, o_ref):
    # a_ref: (1, Ho*Wo, Cin)  with Cin = 4*Cp (lane-dense: 128 lanes for Cp=32)
    # w_ref: (Cin, Cout)      matmul-ready weight
    # o_ref: (1, Ho*Wo, Cout)
    o_ref[0] = jnp.dot(a_ref[0], w_ref[...],
                       preferred_element_type=jnp.float32).astype(o_ref.dtype)


def _space_to_depth_cat_nchw(x):
    """Exact PyTorch slicing/cat semantics (only used for downscale_factor > 2)."""
    d1 = x[:, :, 0::2, 0::2]
    d2 = x[:, :, 1::2, 0::2]
    d3 = x[:, :, 0::2, 1::2]
    d4 = x[:, :, 1::2, 1::2]
    return jnp.concatenate([d1, d2, d3, d4], axis=1)


def prepare_tail_weight(w_tail):
    """OIHW (Cout, 4*Cp, 1, 1) -> matmul-ready (4*Cp, Cout).

    PyTorch cat order puts input channel (dy + 2*dx)*Cp + ci at column k; the
    kernel's im2col columns are ordered dy*2Cp + dx*Cp + ci, so permute once here
    (hoisted: done a single time, never per forward call).
    """
    c_out, c_in = w_tail.shape[0], w_tail.shape[1]
    cp = c_in // 4
    w = w_tail[:, :, 0, 0]                    # (Cout, 4Cp); col = (dy + 2*dx)*Cp + ci
    w = w.reshape(c_out, 2, 2, cp)            # (co, dx, dy, ci)
    w = jnp.transpose(w, (2, 1, 3, 0))        # (dy, dx, ci, co)
    return w.reshape(4 * cp, c_out)           # row = dy*2Cp + dx*Cp + ci


@functools.partial(jax.jit, static_argnames=("downscale_factor",))
def depixelshuffle_forward(x_nchw, w_mat, downscale_factor=2):
    loop = int(math.log(downscale_factor, 2))
    # All but the last space-to-depth level are pure layout glue (hit only for ds > 2).
    for _ in range(loop - 1):
        x_nchw = _space_to_depth_cat_nchw(x_nchw)

    n, cp, h, w = x_nchw.shape
    ho, wo = h // 2, w // 2
    c_in, c_out = w_mat.shape

    # Single layout transform: NCHW -> im2col rows (N, Ho*Wo, 4*Cp), columns ordered
    # (dy, dx, ci).  Free reshapes around one small transpose; 4*Cp = 128 lanes.
    a = x_nchw.reshape(n, cp, ho, 2, wo, 2)
    a = jnp.transpose(a, (0, 2, 4, 3, 5, 1))        # (n, h', w', dy, dx, ci)
    a = a.reshape(n, ho * wo, 4 * cp)

    out_rows = pl.pallas_call(
        _tail_conv1x1_kernel,
        out_shape=jax.ShapeDtypeStruct((n, ho * wo, c_out), x_nchw.dtype),
        grid=(n,),
        in_specs=[
            pl.BlockSpec((1, ho * wo, c_in), lambda i: (i, 0, 0)),
            pl.BlockSpec((c_in, c_out), lambda i: (0, 0)),   # constant block: DMA'd once
        ],
        out_specs=pl.BlockSpec((1, ho * wo, c_out), lambda i: (i, 0, 0)),
        compiler_params=pltpu.CompilerParams(
            dimension_semantics=("parallel",)),   # v7x: batch sharded across both TCs
    )(a, w_mat)

    out = out_rows.reshape(n, ho, wo, c_out)
    return jnp.transpose(out, (0, 3, 1, 2))         # back to PyTorch NCHW


# ---------------------------------------------------------------------------
# Pure-JAX reference mirroring the PyTorch module exactly (for correctness).
# ---------------------------------------------------------------------------
def depixelshuffle_ref(x_nchw, w_tail, downscale_factor=2):
    loop = int(math.log(downscale_factor, 2))
    x = x_nchw
    for _ in range(loop):
        x = _space_to_depth_cat_nchw(x)
    return lax.conv_general_dilated(
        x, w_tail, window_strides=(1, 1), padding="VALID",
        dimension_numbers=("NCHW", "OIHW", "NCHW"))


if __name__ == "__main__":
    key = jax.random.PRNGKey(0)
    kx, kw = jax.random.split(key)

    n_features, downscale_factor = 32, 2
    N, H, W = 2, 16, 16
    c_in = n_features * downscale_factor ** 2

    # PyTorch layouts: input NCHW, tail weight OIHW (bias=False).
    x = jax.random.normal(kx, (N, n_features, H, W), jnp.float32)
    w_tail = jax.random.normal(kw, (n_features, c_in, 1, 1), jnp.float32) * (
        1.0 / math.sqrt(c_in))

    w_mat = prepare_tail_weight(w_tail)   # hoisted, matmul-ready weight

    out = depixelshuffle_forward(x, w_mat, downscale_factor=downscale_factor)
    out = jax.block_until_ready(out)

    ref = depixelshuffle_ref(x, w_tail, downscale_factor)
    assert out.shape == (N, n_features, H // 2, W // 2)
    assert jnp.allclose(out, ref, atol=1e-4, rtol=1e-4), "mismatch vs reference"

    print("KERNEL_OK")
</pallas_src>

<mosaic_0001>
module attributes {stable_mosaic.version = 11 : i64} {
  func.func @_tail_conv1x1_kernel(%arg0: i32, %arg1: memref<1x64x128xf32, #tpu.memory_space<vmem>>, %arg2: memref<128x32xf32, #tpu.memory_space<vmem>>, %arg3: memref<1x64x32xf32, #tpu.memory_space<vmem>>) attributes {dimension_semantics = [#tpu.dimension_semantics<parallel>], iteration_bounds = array<i64: 2>, scalar_prefetch = 0 : i64, scratch_operands = 0 : i64, tpu.core_type = #tpu.core_type<tc>, window_params = [{transform_indices = @transform_0, window_bounds = array<i64: 1, 64, 128>}, {pipeline_mode = #tpu.pipeline_mode<synchronous>, transform_indices = @transform_1, window_bounds = array<i64: 128, 32>}, {transform_indices = @transform_2, window_bounds = array<i64: 1, 64, 32>}]} {
    %c0 = arith.constant 0 : index
    %c0_0 = arith.constant 0 : index
    %c0_1 = arith.constant 0 : index
    %0 = vector.load %arg1[%c0, %c0_0, %c0_1] : memref<1x64x128xf32, #tpu.memory_space<vmem>>, vector<1x64x128xf32>
    %1 = vector.shape_cast %0 : vector<1x64x128xf32> to vector<64x128xf32>
    %c0_2 = arith.constant 0 : index
    %c0_3 = arith.constant 0 : index
    %2 = vector.load %arg2[%c0_2, %c0_3] : memref<128x32xf32, #tpu.memory_space<vmem>>, vector<128x32xf32>
    %cst = arith.constant dense<0.000000e+00> : vector<64x32xf32>
    %3 = tpu.matmul %1, %2, %cst {dimension_numbers = #tpu.dot_dimension_numbers<[1], [0], [0], [1], [0, 0, 1, 1], [], []>} : vector<64x128xf32>, vector<128x32xf32>, vector<64x32xf32> -> vector<64x32xf32>
    %c0_4 = arith.constant 0 : index
    %c0_5 = arith.constant 0 : index
    %c0_6 = arith.constant 0 : index
    %4 = vector.load %arg3[%c0_4, %c0_5, %c0_6] : memref<1x64x32xf32, #tpu.memory_space<vmem>>, vector<1x64x32xf32>
    %5 = vector.shape_cast %4 : vector<1x64x32xf32> to vector<64x32xf32>
    %6 = vector.shape_cast %3 : vector<64x32xf32> to vector<1x64x32xf32>
    tpu.vector_store %arg3[%c0_4, %c0_5, %c0_6], %6 {strides = array<i32>} : memref<1x64x32xf32, #tpu.memory_space<vmem>>, vector<1x64x32xf32>,
    return
  }
  func.func @transform_0(%arg0: i32) -> (i32, i32, i32) {
    %c0_i32 = arith.constant 0 : i32
    %c0_i32_0 = arith.constant 0 : i32
    %c0_i32_1 = arith.constant 0 : i32
    return %arg0, %c0_i32, %c0_i32_0 : i32, i32, i32
  }
  func.func @transform_1(%arg0: i32) -> (i32, i32) {
    %c0_i32 = arith.constant 0 : i32
    %c0_i32_0 = arith.constant 0 : i32
    %c0_i32_1 = arith.constant 0 : i32
    return %c0_i32, %c0_i32_0 : i32, i32
  }
  func.func @transform_2(%arg0: i32) -> (i32, i32, i32) {
    %c0_i32 = arith.constant 0 : i32
    %c0_i32_0 = arith.constant 0 : i32
    %c0_i32_1 = arith.constant 0 : i32
    return %arg0, %c0_i32, %c0_i32_0 : i32, i32, i32
  }
}

</mosaic_0001>

<bundles_post_ra>
// kernel: depixelshuffle_forward.1
= control target key start
LH: loop header
LB: loop body
LE: loop exit
PB: predicated region body
PF: predicated region fallthrough
CT: control target
= control target key end

     0   :  { %7 = vsyncpa [#allocation3], 0  ;;  %s619_s0 = inlined_call_operand.vmem [shape: f32[2,64,128], index: 0, kind: input, shape index: {}]   ;;  %s620_s1 = inlined_call_operand.vmem [shape: f32[128,32], index: 1, kind: input, shape index: {}]   ;;  %s621_s2 = inlined_call_operand.hbm [shape: f32[2,64,32], index: 2, kind: output, shape index: {}]  }
   0x1   :  { %9 = vsyncpa [#allocation3 + $0x1], 0  ;;  %s478_s9 = smov 0   ;;  %s480_s10 = smov 0  }
   0x2   :  { %s482_s11 = smov 0   ;;  %s484_s12 = smov 0  }
   0x3 LB: > { %s499_s13 = sadd.s32 4294967295, %s459_s12   ;;  %s294_s14 = sadd.s32 4294967294, %s459_s12   ;;  %s459_s12 = sphi %s484_s12, %s627_s12   ;;  %s455_s11 = sphi %s482_s11, %s626_s11   ;;  %s451_s10 = sphi %s480_s10, %s625_s10   ;;  %s447_s9 = sphi %s478_s9, %s624_s9  }
   0x4   : > { %s503_s15 = sadd.s32 1, %s459_s12   ;;  %s69_s16 = sadd.s32 1, %s455_s11 }
   0x5   : > { %s66_s17 = ssub.s32 %s459_s12, %s503_s15  ;;  %p79_p0 = scmp.ne.s32.totalorder %s455_s11, %s451_s10 }
   0x6   : > { %p67_p1 = scmp.eq.s32.totalorder %s66_s17, 0  ;;  %p80_p2 = scmp.eq.s32.totalorder %s499_s13, 1 }
   0x7   : > { %p85_p3 = scmp.ne.s32.totalorder %s451_s10, %s447_s9  ;;  %p86_p4 = scmp.eq.s32.totalorder %s294_s14, 1 }
   0x8   : > { %s514_s18 = scalar_select %p67_p1, %s455_s11, %s69_s16  }
   0x9   : > { %p516_p5 = por %p80_p2, %p79_p0  ;;  %p520_p6 = por %p86_p4, %p85_p3 }
   0xa   : > { %p297_p7 = scmp.ge.s32.totalorder %s459_s12, 1  ;;  %p115_p8 = scmp.lt.s32.totalorder %s459_s12, 3 }
   0xc   : > { %p116_p9 = pnand %p297_p7, %p115_p8 }
   0xd   : > { %p137_p10 = scmp.lt.s32.totalorder (!%p116_p9), %s499_s13, 1  ;;  %s134_s17 = sand.u32 (!%p116_p9), 1, %s451_s10  }
   0xe   : > { %119 = sbr.rel (%p116_p9) target bundleno = 196 (0xc4), region = 28  ;;  %s298_s21 = sshll.u32 (!%p116_p9), %s134_s17, 6 }
   0xf   : > { %s136_s22 = scalar_lea.vmem (!%p116_p9), [#allocation2], %s298_s21  ;;  %s307_s23 = sshll.u32 (!%p116_p9), %s499_s13, 6 }
  0x10   : > { %s228_s26 = scalar_lea.hbm (!%p116_p9), %s621_s2, %s307_s23  ;;  %s229_s27 = sshll.u32 (!%p116_p9), %s136_s22, 4  ;;  %s230_s27 = int_to_ptr.vmem [resolvable:$true] %s229_s27 }
  0x11   : > { %s231_s28 = sshll.u32 (!%p116_p9), %s228_s26, 4  ;;  %s417_s5 = scalar_lea.hbm (!%p116_p9), %s621_s2, 128  ;;  %s232_s28 = int_to_ptr.hbm [resolvable:$true] %s231_s28 }
  0x13   : > { %v165_v0 = vld [vmem:[%s620_s1 + $0x78] sm:$0xff]  ;;  %v164_v1 = vld [vmem:[%s620_s1 + $0x70] sm:$0xff]  ;;  %v163_v2 = vld [vmem:[%s620_s1 + $0x68] sm:$0xff]  ;;  %s138_s24 = scalar_select %p137_p10, %s499_s13, 1  ;;  %vm207_vm0 = vcmask 261120  }
  0x14   : > { %309 = vmatpush.msra.mxu2 %v165_v0  ;;  %310 = vmatpush.msra.mxu3 %v165_v0  ;;  %v162_v3 = vld [vmem:[%s620_s1 + $0x60] sm:$0xff]  ;;  %v161_v4 = vld [vmem:[%s620_s1 + $0x58] sm:$0xff]  ;;  %v160_v5 = vld [vmem:[%s620_s1 + $0x50] sm:$0xff]  ;;  %s217_s13 = scalar_lea.sflag [#allocation3], %s134_s17 }
  0x15   : > { %166 = vmatpush.msra.mxu0 %v165_v0  ;;  %308 = vmatpush.msra.mxu1 %v165_v0  ;;  %v159_v6 = vld [vmem:[%s620_s1 + $0x48] sm:$0xff]  ;;  %v158_v7 = vld [vmem:[%s620_s1 + $0x40] sm:$0xff]  ;;  %v157_v8 = vld [vmem:[%s620_s1 + $0x38] sm:$0xff]  ;;  %s306_s29 = sshll.u32 %s138_s24, 6 }
  0x16   : > { %312 = vmatpush.msra.mxu2 %v164_v1  ;;  %313 = vmatpush.msra.mxu3 %v164_v1  ;;  %v156_v9 = vld [vmem:[%s620_s1 + $0x30] sm:$0xff]  ;;  %v155_v10 = vld [vmem:[%s620_s1 + $0x28] sm:$0xff]  ;;  %v154_v11 = vld [vmem:[%s620_s1 + $0x20] sm:$0xff]  ;;  %s141_s8 = scalar_lea.vmem %s619_s0, %s306_s29  ;;  %s411_s29 = sshra.s32 %s232_s28, 4  ;;  %s412_s29 = int_to_ptr.hbm [resolvable:$true] %s411_s29 }
  0x17   : > { %167 = vmatpush.msra.mxu0 %v164_v1  ;;  %311 = vmatpush.msra.mxu1 %v164_v1  ;;  %v153_v12 = vld [vmem:[%s620_s1 + $0x18] sm:$0xff]  ;;  %v152_v13 = vld [vmem:[%s620_s1 + $0x10] sm:$0xff]  ;;  %v151_v14 = vld [vmem:[%s620_s1 + $0x8] sm:$0xff]  ;;  %s413_s30 = scalar_lea.hbm %s412_s29, 64  ;;  %p418_p0 = scmp.lt.s32.totalorder %s412_s29, %s621_s2 }
  0x18   : > { %315 = vmatpush.msra.mxu2 %v163_v2  ;;  %316 = vmatpush.msra.mxu3 %v163_v2  ;;  %v150_v15 = vld [vmem:[%s620_s1] sm:$0xff]  ;;  %v148_v17 = vld [vmem:[%s141_s8 + $0x30] sm:$0xff]  ;;  %v147_v20 = vld [vmem:[%s141_s8 + $0x28] sm:$0xff]  ;;  %p414_p11 = scmp.ne.s32.totalorder %s412_s29, %s413_s30  ;;  %p419_p1 = scmp.lt.s32.totalorder %s417_s5, %s413_s30 }
  0x19   : > { %168 = vmatpush.msra.mxu0 %v163_v2  ;;  %314 = vmatpush.msra.mxu1 %v163_v2  ;;  %v146_v16 = vld [vmem:[%s141_s8 + $0x20] sm:$0xff]  ;;  %v144_v19 = vld [vmem:[%s141_s8 + $0x10] sm:$0xff]  ;;  %v149_v21 = vld [vmem:[%s141_s8 + $0x38] sm:$0xff] }
  0x1a   : > { %318 = vmatpush.msra.mxu2 %v162_v3  ;;  %319 = vmatpush.msra.mxu3 %v162_v3  ;;  %v142_v18 = vld [vmem:[%s141_s8] sm:$0xff]  ;;  %v143_v22 = vld [vmem:[%s141_s8 + $0x8] sm:$0xff]  ;;  %v145_v23 = vld [vmem:[%s141_s8 + $0x18] sm:$0xff]  ;;  %p415_p12 = pnand %p414_p11, %p516_p5  ;;  %p420_p2 = por %p419_p1, %p418_p0 }
  0x1b   : > { %169 = vmatpush.msra.mxu0 %v162_v3  ;;  %317 = vmatpush.msra.mxu1 %v162_v3 }
  0x1c   : > { %321 = vmatpush.msra.mxu2 %v161_v4  ;;  %322 = vmatpush.msra.mxu3 %v161_v4  ;;  %p416_p13 = pneg %p415_p12 }
  0x1d   : > { %170 = vmatpush.msra.mxu0 %v161_v4  ;;  %320 = vmatpush.msra.mxu1 %v161_v4 }
  0x1e   : > { %324 = vmatpush.msra.mxu2 %v160_v5  ;;  %325 = vmatpush.msra.mxu3 %v160_v5  ;;  %p421_p3 = pnand %p420_p2, %p416_p13 }
  0x1f   : > { %171 = vmatpush.msra.mxu0 %v160_v5  ;;  %323 = vmatpush.msra.mxu1 %v160_v5 }
  0x20   : > { %327 = vmatpush.msra.mxu2 %v159_v6  ;;  %328 = vmatpush.msra.mxu3 %v159_v6 }
  0x21   : > { %172 = vmatpush.msra.mxu0 %v159_v6  ;;  %326 = vmatpush.msra.mxu1 %v159_v6 }
  0x22   : > { %330 = vmatpush.msra.mxu2 %v158_v7  ;;  %331 = vmatpush.msra.mxu3 %v158_v7 }
  0x23   : > { %173 = vmatpush.msra.mxu0 %v158_v7  ;;  %329 = vmatpush.msra.mxu1 %v158_v7 }
  0x24   : > { %333 = vmatpush.msra.mxu2 %v157_v8  ;;  %334 = vmatpush.msra.mxu3 %v157_v8 }
  0x25   : > { %174 = vmatpush.msra.mxu0 %v157_v8  ;;  %332 = vmatpush.msra.mxu1 %v157_v8 }
  0x26   : > { %336 = vmatpush.msra.mxu2 %v156_v9  ;;  %337 = vmatpush.msra.mxu3 %v156_v9 }
  0x27   : > { %175 = vmatpush.msra.mxu0 %v156_v9  ;;  %335 = vmatpush.msra.mxu1 %v156_v9 }
  0x28   : > { %339 = vmatpush.msra.mxu2 %v155_v10  ;;  %340 = vmatpush.msra.mxu3 %v155_v10 }
  0x29   : > { %176 = vmatpush.msra.mxu0 %v155_v10  ;;  %338 = vmatpush.msra.mxu1 %v155_v10 }
  0x2a   : > { %342 = vmatpush.msra.mxu2 %v154_v11  ;;  %343 = vmatpush.msra.mxu3 %v154_v11 }
  0x2b   : > { %177 = vmatpush.msra.mxu0 %v154_v11  ;;  %341 = vmatpush.msra.mxu1 %v154_v11 }
  0x2c   : > { %345 = vmatpush.msra.mxu2 %v153_v12  ;;  %346 = vmatpush.msra.mxu3 %v153_v12 }
  0x2d   : > { %178 = vmatpush.msra.mxu0 %v153_v12  ;;  %344 = vmatpush.msra.mxu1 %v153_v12 }
  0x2e   : > { %348 = vmatpush.msra.mxu2 %v152_v13  ;;  %349 = vmatpush.msra.mxu3 %v152_v13 }
  0x2f   : > { %179 = vmatpush.msra.mxu0 %v152_v13  ;;  %347 = vmatpush.msra.mxu1 %v152_v13 }
  0x30   : > { %351 = vmatpush.msra.mxu2 %v151_v14  ;;  %352 = vmatpush.msra.mxu3 %v151_v14 }
  0x31   : > { %180 = vmatpush.msra.mxu0 %v151_v14  ;;  %350 = vmatpush.msra.mxu1 %v151_v14 }
  0x32   : > { %354 = vmatpush.msra.mxu2 %v150_v15  ;;  %355 = vmatpush.msra.mxu3 %v150_v15 }
  0x33   : > { %194 = vmatmul.f32.vlgmr.msra.gmra.mxu2 %v146_v16  ;;  %200 = vmatmul.f32.vlgmr.msra.gmra.mxu3 %v148_v17 }
  0x34   : > { %181 = vmatpush.msra.mxu0 %v150_v15  ;;  %353 = vmatpush.msra.mxu1 %v150_v15 }
  0x35   : > { %182 = vmatmul.f32.vlgmr.msra.gmra.mxu0 %v142_v18  ;;  %188 = vmatmul.f32.vlgmr.msra.gmra.mxu1 %v144_v19 }
  0x3b   : > { %197 = vmatmul.f32.gmra.mxu2 %v147_v20  ;;  %203 = vmatmul.f32.gmra.mxu3 %v149_v21 }
  0x3d   : > { %185 = vmatmul.f32.gmra.mxu0 %v143_v22  ;;  %191 = vmatmul.f32.gmra.mxu1 %v145_v23 }
  0xb2   : > { %v183_v24 = vpop.f32.mrf.mxu0  ;;  %v189_v25 = vpop.f32.mrf.mxu1 }
  0xb3   : > { %208 = vst.msk [vmem:[%s136_s22] sm:$0xff] %vm207_vm0, %v183_v24 }
  0xb4   : > { %210 = vst.msk [vmem:[%s136_s22 + $0x10] sm:$0xff] %vm207_vm0, %v189_v25 }
  0xb6   : > { %v195_v26 = vpop.f32.mrf.mxu2  ;;  %v201_v27 = vpop.f32.mrf.mxu3 }
  0xb7   : > { %212 = vst.msk [vmem:[%s136_s22 + $0x20] sm:$0xff] %vm207_vm0, %v195_v26 }
  0xb8   : > { %214 = vst.msk [vmem:[%s136_s22 + $0x30] sm:$0xff] %vm207_vm0, %v201_v27 }
  0xba   : > { %v186_v28 = vpop.f32.mrf.mxu0  ;;  %v192_v29 = vpop.f32.mrf.mxu1 }
  0xbb   : > { %209 = vst.msk [vmem:[%s136_s22 + $0x8] sm:$0xff] %vm207_vm0, %v186_v28 }
  0xbc   : > { %211 = vst.msk [vmem:[%s136_s22 + $0x18] sm:$0xff] %vm207_vm0, %v192_v29 }
  0xbe   : > { %v198_v30 = vpop.f32.mrf.mxu2  ;;  %v204_v31 = vpop.f32.mrf.mxu3 }
  0xbf   : > { %213 = vst.msk [vmem:[%s136_s22 + $0x28] sm:$0xff] %vm207_vm0, %v198_v30 }
  0xc0   : > { %215 = vst.msk [vmem:[%s136_s22 + $0x38] sm:$0xff] %vm207_vm0, %v204_v31 }
  0xc1   : > { %424 = shalt.err (!%p421_p3)
}
  0xc2   : > { %s461_s8 = smov 128   ;;  %s462_s14 = smov 8  }
  0xc3   : > { %356 = dma.vmem_to_hbm [thread:$0]  (%p516_p5), %s230_s27, 1024, %s232_s28, %s217_s13, %s461_s8, %s461_s8, %s462_s14  }
  0xc4 PF: > { %p362_p4 = scmp.ge.s32.totalorder %s459_s12, 2  ;;  %s246_s16 = sand.u32 1, %s447_s9  }
  0xc5   : > { %s247_s17 = scalar_lea.sflag [#allocation3], %s246_s16 }
  0xc6   : > { %p359_p7 = pnand %p362_p4, %p520_p6 }
  0xc8   : > { %p360_p8 = pneg %p359_p7 }
  0xca   : > { %442 = dma.done.wait (%p360_p8), %s247_s17, 1024  }
  0xcb   : > { %444 = vsyncadd (%p360_p8), %s247_s17, 4294966272  ;;  %p12_p9 = scmp.ge.s32.totalorder %s503_s15, 4   ;;  %s624_s9 = smov %s451_s10 }
  0xcc   : > { %s625_s10 = smov %s455_s11  ;;  %s626_s11 = smov %s514_s18 }
  0xcd   : > { %s627_s12 = smov %s503_s15  ;;  %14 = sbr.rel (!%p12_p9) target bundleno = 3 (0x3), region = 63 }
  0xd2   :  { %253 = vsyncpa [#allocation3], 1 }
  0xd3   :  { %255 = vsyncpa [#allocation3 + $0x1], 1 }

</bundles_post_ra>
